<compile_context>
chip_gen: v5e
topology: v5e:2x2
jax: 0.10.0
libtpu: 0.0.40
codegen_flags: <defaults>
</compile_context>

<pallas_src>
import jax
import jax.numpy as jnp
from jax.experimental import pallas as pl
from jax.experimental.pallas import tpu as pltpu

FEAT = 900      # in_features of nn.Linear(900, 1)
TILE_M = 2048   # rows per grid step; footprint handled via vmem_limit_bytes


def logreg_kernel(x_ref, w_ref, b_ref, o_ref):
    # x_ref: (tm, 900) f32 VMEM   w_ref: (1, 900) f32 VMEM (resident)
    # b_ref: (1, 1)   f32 SMEM    o_ref: (tm, 1)  f32 VMEM
    prod = x_ref[...] * w_ref[...]                      # VPU, bcast over sublanes
    s = jnp.sum(prod, axis=-1, keepdims=True)           # XLU lane reduce, exact f32
    o_ref[...] = (s + b_ref[0, 0]).astype(o_ref.dtype)


def logreg_forward(x, w_row, b, *, tile_m=TILE_M):
    """x: (..., 900) f32; w_row: (1, 900) f32; b: (1, 1) f32. Returns (-1, 4)."""
    feat = x.shape[-1]
    assert feat == FEAT
    x2 = x.reshape(-1, feat)                  # torch: x.view(-1, x.size(-1))
    m = x2.shape[0]

    # Block rows: multiple of 8 (sublane), no larger than needed for small m.
    tm = min(tile_m, ((m + 7) // 8) * 8)
    grid = (pl.cdiv(m, tm),)

    # Scoped VMEM sized to the real double-buffered footprint (+ headroom),
    # so the tile sweep is portable across v5e/v6e/v7x default limits.
    lane_feat = ((feat + 127) // 128) * 128           # 900 -> 1024 lane padding
    x_tile_bytes = tm * lane_feat * 4
    out_tile_bytes = tm * 128 * 4                     # (tm,1) padded to 128 lanes
    w_tile_bytes = 8 * lane_feat * 4
    vmem_limit = max(
        2 * (x_tile_bytes + out_tile_bytes + w_tile_bytes) + (4 << 20),
        16 << 20,
    )

    cost = pl.CostEstimate(
        flops=2 * m * feat,
        transcendentals=0,
        bytes_accessed=m * feat * 4 + m * 4 + feat * 4 + 4,
    )

    out = pl.pallas_call(
        logreg_kernel,
        out_shape=jax.ShapeDtypeStruct((m, 1), jnp.float32),
        grid=grid,
        in_specs=[
            # Row-tiled input; feature dim = full array dim (900), legal block.
            pl.BlockSpec((tm, feat), lambda i: (i, 0)),
            # Tiny weight row, same block every step (stays resident).
            pl.BlockSpec((1, feat), lambda i: (0, 0)),
            # Bias as an SMEM scalar.
            pl.BlockSpec(memory_space=pltpu.MemorySpace.SMEM),
        ],
        out_specs=pl.BlockSpec((tm, 1), lambda i: (i, 0)),
        compiler_params=pltpu.CompilerParams(
            dimension_semantics=("parallel",),
            vmem_limit_bytes=int(vmem_limit),
        ),
        cost_estimate=cost,
    )(x2, w_row, b)

    return out.reshape(-1, 4)                 # torch: .view(-1, 4)


def init_params(key):
    # nn.Linear(900, 1): weight (1, 900) (PyTorch layout kept as-is), bias (1,1)
    kw, kb = jax.random.split(key)
    bound = 1.0 / (FEAT ** 0.5)
    w = jax.random.uniform(kw, (1, FEAT), jnp.float32, minval=-bound, maxval=bound)
    b = jax.random.uniform(kb, (1, 1), jnp.float32, minval=-bound, maxval=bound)
    return w, b


if __name__ == "__main__":
    key = jax.random.PRNGKey(0)
    kx, kp, kx2 = jax.random.split(key, 3)

    # batch=2, 4 items per row (forward reshapes to (-1, 4)), 900 features
    x = jax.random.normal(kx, (2, 4, FEAT), jnp.float32)
    w, b = init_params(kp)

    logits = jax.block_until_ready(logreg_forward(x, w, b))

    # reference check in plain JAX (exact f32 multiply+sum, like the kernel)
    ref = (jnp.sum(x.reshape(-1, FEAT) * w, axis=-1, keepdims=True)
           + b[0, 0]).reshape(-1, 4)
    assert logits.shape == (2, 4), logits.shape
    assert jnp.allclose(logits, ref, atol=1e-4, rtol=1e-4)

    # Ragged-tile check: m=24 rows with tile_m=16 -> grid=2, last tile partial.
    # Confirms masked writeback of the ragged output block (no padded-row leak).
    xr = jax.random.normal(kx2, (6, 4, FEAT), jnp.float32)
    logits_r = jax.block_until_ready(logreg_forward(xr, w, b, tile_m=16))
    ref_r = (jnp.sum(xr.reshape(-1, FEAT) * w, axis=-1, keepdims=True)
             + b[0, 0]).reshape(-1, 4)
    assert logits_r.shape == (6, 4), logits_r.shape
    assert jnp.allclose(logits_r, ref_r, atol=1e-4, rtol=1e-4)

    print("KERNEL_OK")
</pallas_src>

<mosaic_0001>
module attributes {stable_mosaic.version = 11 : i64} {
  func.func @logreg_kernel(%arg0: i32, %arg1: memref<8x900xf32, #tpu.memory_space<vmem>>, %arg2: memref<1x900xf32, #tpu.memory_space<vmem>>, %arg3: memref<1x1xf32, #tpu.memory_space<smem>>, %arg4: memref<8x1xf32, #tpu.memory_space<vmem>>) attributes {dimension_semantics = [#tpu.dimension_semantics<parallel>], iteration_bounds = array<i64: 1>, scalar_prefetch = 0 : i64, scratch_operands = 0 : i64, tpu.core_type = #tpu.core_type<tc>, window_params = [{transform_indices = @transform_0, window_bounds = array<i64: 8, 900>}, {pipeline_mode = #tpu.pipeline_mode<synchronous>, transform_indices = @transform_1, window_bounds = array<i64: 1, 900>}, {transform_indices = @transform_2, window_bounds = array<i64: 1, 1>}, {transform_indices = @transform_3, window_bounds = array<i64: 8, 1>}]} {
    %c0 = arith.constant 0 : index
    %c0_0 = arith.constant 0 : index
    %0 = vector.load %arg1[%c0, %c0_0] : memref<8x900xf32, #tpu.memory_space<vmem>>, vector<8x900xf32>
    %c0_1 = arith.constant 0 : index
    %c0_2 = arith.constant 0 : index
    %1 = vector.load %arg2[%c0_1, %c0_2] : memref<1x900xf32, #tpu.memory_space<vmem>>, vector<1x900xf32>
    %2 = vector.broadcast %1 : vector<1x900xf32> to vector<8x900xf32>
    %3 = arith.mulf %0, %2 : vector<8x900xf32>
    %cst = arith.constant dense<0.000000e+00> : vector<8xf32>
    %4 = vector.multi_reduction <add>, %3, %cst [1] : vector<8x900xf32> to vector<8xf32>
    %5 = vector.shape_cast %4 : vector<8xf32> to vector<8x1xf32>
    %c0_3 = arith.constant 0 : index
    %c0_4 = arith.constant 0 : index
    %6 = memref.load %arg3[%c0_3, %c0_4] : memref<1x1xf32, #tpu.memory_space<smem>>
    %7 = vector.broadcast %6 : f32 to vector<8x1xf32>
    %8 = arith.addf %5, %7 : vector<8x1xf32>
    %c0_5 = arith.constant 0 : index
    %c0_6 = arith.constant 0 : index
    %9 = vector.load %arg4[%c0_5, %c0_6] : memref<8x1xf32, #tpu.memory_space<vmem>>, vector<8x1xf32>
    tpu.vector_store %arg4[%c0_5, %c0_6], %8 {strides = array<i32>} : memref<8x1xf32, #tpu.memory_space<vmem>>, vector<8x1xf32>,
    return
  }
  func.func @transform_0(%arg0: i32) -> (i32, i32) {
    %c0_i32 = arith.constant 0 : i32
    %c0_i32_0 = arith.constant 0 : i32
    return %arg0, %c0_i32 : i32, i32
  }
  func.func @transform_1(%arg0: i32) -> (i32, i32) {
    %c0_i32 = arith.constant 0 : i32
    %c0_i32_0 = arith.constant 0 : i32
    %c0_i32_1 = arith.constant 0 : i32
    return %c0_i32, %c0_i32_0 : i32, i32
  }
  func.func @transform_2(%arg0: i32) -> (i32, i32) {
    %c0_i32 = arith.constant 0 : i32
    %c0_i32_0 = arith.constant 0 : i32
    %c0_i32_1 = arith.constant 0 : i32
    return %c0_i32, %c0_i32_0 : i32, i32
  }
  func.func @transform_3(%arg0: i32) -> (i32, i32) {
    %c0_i32 = arith.constant 0 : i32
    %c0_i32_0 = arith.constant 0 : i32
    return %arg0, %c0_i32 : i32, i32
  }
}

</mosaic_0001>

<bundles_post_ra>
// kernel: tpu_custom_call.1
= control target key start
LH: loop header
LB: loop body
LE: loop exit
PB: predicated region body
PF: predicated region fallthrough
CT: control target
= control target key end

     0   :  { %9 = vsyncpa [#allocation4], 0  ;;  %s187_s0 = inlined_call_operand.hbm [shape: f32[8,900], index: 0, kind: input, shape index: {}]   ;;  %s188_s1 = inlined_call_operand.hbm [shape: f32[1,900], index: 1, kind: input, shape index: {}]   ;;  %s189_s2 = inlined_call_operand.<no memory space> [shape: f32[1,1], index: 2, kind: input, shape index: {}]   ;;  %s190_s3 = inlined_call_operand.vmem [shape: f32[8,1], index: 3, kind: output, shape index: {}]  }
   0x1   :  { %s16_s14 = sshll.u32 %s187_s0, 4  ;;  %s17_s14 = int_to_ptr.hbm [resolvable:$true] %s16_s14 }
   0x2   :  { %10 = vsyncpa [#allocation6], 0  ;;  %s153_s15 = smov [#allocation3]   ;;  %s27_s19 = sshll.u32 %s188_s1, 4  ;;  %s28_s19 = int_to_ptr.hbm [resolvable:$true] %s27_s19 }
   0x3   :  { %s18_s16 = sshll.u32 %s153_s15, 4  ;;  %s154_s20 = smov [#allocation5]   ;;  %s19_s16 = int_to_ptr.vmem [resolvable:$true] %s18_s16 }
   0x4   :  { %21 = dma.hbm_to_vmem [thread:$0]  %s17_s14, 1024, %s19_s16, [#allocation4]  }
   0x5   :  { %s29_s21 = sshll.u32 %s154_s20, 4  ;;  %s30_s21 = int_to_ptr.vmem [resolvable:$true] %s29_s21 }
   0x6   :  { %32 = dma.hbm_to_vmem [thread:$0]  %s28_s19, 128, %s30_s21, [#allocation6]  }
   0x7   :  { %149 = dma.done.wait [#allocation4], 1024  }
   0x8   :  { %150 = vsyncadd [#allocation4], 4294966272 }
   0x9   :  { %151 = dma.done.wait [#allocation6], 128  }
   0xa   :  { %152 = vsyncadd [#allocation6], 4294967168  ;;  %v43_v0 = vld [vmem:[#allocation3] sm:$0xff]  ;;  %v44_v1 = vld [vmem:[#allocation3 + $0x8] sm:$0xff]  ;;  %vm83_vm0 = vcmask 31744   ;;  %v89_v33 = vstv %s189_s2  ;;  %vm91_vm1 = vcmask 7168  }
   0xb   :  { %v45_v2 = vld [vmem:[#allocation3 + $0x10] sm:$0xff]  ;;  %v51_v3 = vld [vmem:[#allocation5] sm:$0xff]  ;;  %v46_v8 = vld [vmem:[#allocation3 + $0x18] sm:$0xff] }
   0xc   :  { %v53_v4 = vperm.slane %v51_v3, 0  ;;  %v54_v5 = vperm.slane %v51_v3, 1  ;;  %v55_v6 = vperm.slane %v51_v3, 2  ;;  %v56_v7 = vperm.slane %v51_v3, 3  ;;  %v47_v13 = vld [vmem:[#allocation3 + $0x20] sm:$0xff]  ;;  %v48_v17 = vld [vmem:[#allocation3 + $0x28] sm:$0xff] }
   0xd   :  { %v57_v9 = vperm.slane %v51_v3, 4  ;;  %v58_v14 = vperm.slane %v51_v3, 5  ;;  %v60_v18 = vperm.slane %v51_v3, 7  ;;  %v50_v19 = vld [vmem:[#allocation3 + $0x38] sm:$0xff]  ;;  %v59_v20 = vperm.slane %v51_v3, 6  ;;  %v49_v23 = vld [vmem:[#allocation3 + $0x30] sm:$0xff] }
   0xe   :  { %v69_v10 = vmul.f32 %v53_v4, %v43_v0  ;;  %v70_v11 = vmul.f32 %v54_v5, %v44_v1  ;;  %v71_v12 = vmul.f32 %v55_v6, %v45_v2  ;;  %v72_v15 = vmul.f32 %v56_v7, %v46_v8 }
   0xf   :  { %v73_v21 = vmul.f32 %v57_v9, %v47_v13  ;;  %v74_v24 = vmul.f32 %v58_v14, %v48_v17  ;;  %v76_v26 = vmul.f32 %v60_v18, %v50_v19  ;;  %v75_v27 = vmul.f32 %v59_v20, %v49_v23 }
  0x10   :  { %v77_v16 = vadd.f32 %v70_v11, %v69_v10 }
  0x11   :  { %v84_v30 = vsel %vm83_vm0, %v76_v26, 0.0 }
  0x12   :  { %v78_v22 = vadd.f32 %v77_v16, %v71_v12 }
  0x14   :  { %v79_v25 = vadd.f32 %v78_v22, %v72_v15 }
  0x16   :  { %v80_v28 = vadd.f32 %v79_v25, %v73_v21 }
  0x18   :  { %v81_v29 = vadd.f32 %v80_v28, %v74_v24 }
  0x1a   :  { %v82_v31 = vadd.f32 %v81_v29, %v75_v27 }
  0x1c   :  { %v85_v32 = vadd.f32 %v84_v30, %v82_v31 }
  0x1e   :  { %86 = vadd.xlane.f32.xlu0 %v85_v32 }
  0x91   :  { %v87_v34 = vpop.xlane.xlu0 %86 }
  0x92   :  { %v90_v35 = vadd.f32 %v89_v33, %v87_v34 }
  0x94   :  { %92 = vst.msk [vmem:[%s190_s3] sm:$0xff] %vm91_vm1, %v90_v35 }
  0x95   :  { %97 = vsyncpa [#allocation4], 1 }
  0x96   :  { %98 = vsyncpa [#allocation6], 1 }

</bundles_post_ra>
